<compile_context>
chip_gen: v6e
topology: v6e:2x2x1
jax: 0.10.0
libtpu: 0.0.40
codegen_flags: <defaults>
</compile_context>

<pallas_src>
import functools

import jax
import jax.numpy as jnp
from jax.experimental import pallas as pl
from jax.experimental.pallas import tpu as pltpu


# ------------------------------ pre-pass kernel -------------------------------
# Projects key_feats once per batch into k (2-layer) and v (1-layer), stored bf16.

def _kv_project_kernel(kf_ref, w_ref, b_ref, k_ref, v_ref, *, ct, ck):
    f32 = jnp.float32
    kf = kf_ref[0]                                    # (Ck, TP) f32, pixel tile
    w = w_ref[...]
    b = b_ref[...]
    wkv1 = w[0:2 * ct, 0:ck]                          # fused key|value first layer
    bkv1 = b[0:2 * ct]
    wk2 = w[2 * ct:3 * ct, 0:ct]
    bk2 = b[2 * ct:3 * ct]

    kv = jax.lax.dot_general(wkv1, kf, (((1,), (0,)), ((), ())),
                             preferred_element_type=f32)
    kv = jnp.maximum(kv + bkv1, 0.0)                  # (2Ct, TP)
    k = jax.lax.dot_general(wk2, kv[:ct], (((1,), (0,)), ((), ())),
                            preferred_element_type=f32)
    k = jnp.maximum(k + bk2, 0.0)                     # (Ct, TP)
    k_ref[0] = k.astype(k_ref.dtype)
    v_ref[0] = kv[ct:].astype(v_ref.dtype)


# ------------------------------ attention kernel ------------------------------

def _attn_kernel(qf_ref, k_ref, v_ref, w_ref, b_ref, out_ref, *,
                 ct, cq, co, hw, hw_pad, exp_bf16):
    f32, bf16 = jnp.float32, jnp.bfloat16
    qf = qf_ref[0]                                    # (Cq, TQ) f32, query-pixel tile
    w = w_ref[...]
    b = b_ref[...]
    wq1 = w[0:ct, 0:cq]
    bq1 = b[0:ct]
    wq2 = w[ct:2 * ct, 0:ct]                          # softmax scale pre-folded here
    bq2 = b[ct:2 * ct]
    wo = w[2 * ct:2 * ct + co, 0:ct]
    bo = b[2 * ct:2 * ct + co]

    def proj(wm, bv, x):
        # fused 1x1 conv + eval-BN + ReLU, channel-major: (Cout,Cin)@(Cin,N) + (Cout,1)
        y = jax.lax.dot_general(wm, x, (((1,), (0,)), ((), ())),
                                preferred_element_type=f32)
        return jnp.maximum(y + bv, 0.0)

    q = proj(wq2, bq2, proj(wq1, bq1, qf))            # (Ct, TQ) f32
    k = k_ref[0]                                      # (Ct, HWp) bf16 (precomputed)
    v = v_ref[0]                                      # (Ct, HWp) bf16 (precomputed)

    # Transposed scores: simT[key, query] = k^T @ q  -> (HWp, TQ).
    # Contracting dim 0 of both operands (MXU trans_a form); no large transposes.
    simT = jax.lax.dot_general(k, q.astype(bf16), (((0,), (0,)), ((), ())),
                               preferred_element_type=f32)
    if hw_pad != hw:
        # Padded key pixels project to relu(bias) != 0 -> mask them out of the softmax.
        key_idx = jax.lax.broadcasted_iota(jnp.int32, simT.shape, 0)
        simT = jnp.where(key_idx < hw, simT, -1e30)

    m = jnp.max(simT, axis=0, keepdims=True)          # (1, TQ)
    z = simT - m
    if exp_bf16:
        p = jnp.exp(z.astype(bf16))                   # bf16 EUP (v6e / v7x)
    else:
        p = jnp.exp(z)                                # f32 (v5e and unknown)
    s = jnp.sum(p, axis=0, keepdims=True, dtype=f32)  # (1, TQ) f32 row-sum

    # Unnormalized PV: plain (Ct,HWp)@(HWp,TQ); normalize only the small ctx block.
    ctx = jax.lax.dot_general(v, p.astype(bf16), (((1,), (0,)), ((), ())),
                              preferred_element_type=f32)       # (Ct, TQ)
    ctx = ctx * pl.reciprocal(s, approx=True)

    out_ref[0] = proj(wo, bo, ctx).astype(out_ref.dtype)        # (Co, TQ)


# --------------------------------- wrapper ------------------------------------

def _fuse_conv_bn(w, gamma, beta, mean, var, eps=1e-5):
    """Fold eval-mode BN into a 1x1 conv: y = W_eff @ x + b_eff."""
    s = gamma / jnp.sqrt(var + eps)
    w_eff = (w * s[:, None]).astype(jnp.float32)
    b_eff = (beta - mean * s)[:, None].astype(jnp.float32)
    return w_eff, b_eff


def _pack_weights(mats):
    maxc = max(m.shape[1] for m in mats)
    rows = [jnp.pad(m, ((0, 0), (0, maxc - m.shape[1]))) for m in mats]
    return jnp.concatenate(rows, axis=0).astype(jnp.float32)


def _pack_biases(bs):
    return jnp.concatenate(bs, axis=0).astype(jnp.float32)


def _vmem_capacity_bytes():
    try:
        info = pltpu.get_tpu_info()
        cap = getattr(info, "vmem_capacity_bytes", None)
        if cap:
            return int(cap)
    except Exception:
        pass
    return 64 * 1024 * 1024          # conservative (v7x per-TC physical)


def _exp_in_bf16():
    try:
        kind = jax.devices()[0].device_kind.lower()
        return any(t in kind for t in ("v6", "v7", "tpu7"))
    except Exception:
        return False


def self_attention_block(query_feats, key_feats, params, transform_channels, tq=None):
    """query_feats: (B, Cq, H, W), key_feats: (B, Ck, H, W) — NCHW like PyTorch."""
    B, Cq, H, W = query_feats.shape
    Bk, Ck, Hk, Wk = key_feats.shape
    assert (B, H, W) == (Bk, Hk, Wk)
    HW = H * W
    hw_pad = ((HW + 127) // 128) * 128

    # TODO(synk): kernel is wired for key_query_num_convs=2 and value_out_num_convs=1
    #             (the module config exercised here); other depths need a generated body.
    assert len(params["query"]) == 2 and len(params["key"]) == 2
    assert len(params["value"]) == 1 and len(params["out"]) == 1
    (wq1, bq1), (wq2, bq2) = params["query"]
    (wk1, bk1), (wk2, bk2) = params["key"]
    (wv, bv), = params["value"]
    (wo, bo), = params["out"]
    Ct = wq1.shape[0]
    Co = wo.shape[0]

    # Fold the softmax scale into the last query projection (scale>0 commutes with ReLU).
    scale = float(transform_channels) ** (-0.5)
    wq2 = wq2 * scale
    bq2 = bq2 * scale

    # Pack projections sharing key_feats into one matmul; consolidate weights/biases
    # into one buffer each per kernel (static slices in-kernel are free).
    wkv1 = jnp.concatenate([wk1, wv], axis=0)         # (2Ct, Ck)
    bkv1 = jnp.concatenate([bk1, bv], axis=0)         # (2Ct, 1)
    w_kv = _pack_weights([wkv1, wk2])
    b_kv = _pack_biases([bkv1, bk2])
    w_q = _pack_weights([wq1, wq2, wo])
    b_q = _pack_biases([bq1, bq2, bo])

    # NCHW -> (B, C, HW) is a pure reshape; pad the pixel axis to a lane multiple.
    qf = query_feats.reshape(B, Cq, HW).astype(jnp.float32)
    kf = key_feats.reshape(B, Ck, HW).astype(jnp.float32)
    if hw_pad != HW:
        pad = ((0, 0), (0, 0), (0, hw_pad - HW))
        qf = jnp.pad(qf, pad)
        kf = jnp.pad(kf, pad)

    vmem_cap = _vmem_capacity_bytes()
    budget = int(vmem_cap * 0.70)     # headroom for Mosaic internal scratch

    # ---- pre-pass: k/v projection, once per batch (hoisted out of the query loop) ----
    def _kv_vmem_bytes(t):
        return (2 * Ck * t * 4            # kf block (double-buffered, f32)
                + 2 * 2 * Ct * t * 2      # k, v output blocks (double-buffered, bf16)
                + (1 << 20))              # weights + slack
    tp = next((t for t in (2048, 1024, 512, 256, 128)
               if hw_pad % t == 0 and _kv_vmem_bytes(t) <= budget), 128)

    kv_kernel = functools.partial(_kv_project_kernel, ct=Ct, ck=Ck)
    k_bf, v_bf = pl.pallas_call(
        kv_kernel,
        out_shape=(jax.ShapeDtypeStruct((B, Ct, hw_pad), jnp.bfloat16),
                   jax.ShapeDtypeStruct((B, Ct, hw_pad), jnp.bfloat16)),
        grid_spec=pltpu.PrefetchScalarGridSpec(
            num_scalar_prefetch=0,
            grid=(B, hw_pad // tp),
            in_specs=[
                pl.BlockSpec((1, Ck, tp), lambda b, p: (b, 0, p)),
                pl.BlockSpec(w_kv.shape, lambda b, p: (0, 0)),
                pl.BlockSpec(b_kv.shape, lambda b, p: (0, 0)),
            ],
            out_specs=[
                pl.BlockSpec((1, Ct, tp), lambda b, p: (b, 0, p)),
                pl.BlockSpec((1, Ct, tp), lambda b, p: (b, 0, p)),
            ],
        ),
        compiler_params=pltpu.CompilerParams(
            dimension_semantics=("parallel", "parallel"),
            vmem_limit_bytes=int(min(max(2 * _kv_vmem_bytes(tp), 16 << 20),
                                     int(vmem_cap * 0.85))),
        ),
        cost_estimate=pl.CostEstimate(
            flops=int(2.0 * B * hw_pad * (2 * Ct * Ck + Ct * Ct)),
            transcendentals=0,
            bytes_accessed=int(kf.size * 4 + 2 * B * Ct * hw_pad * 2 * 2),
        ),
    )(kf, w_kv, b_kv)

    # ---- attention pass: query tiles over precomputed k/v --------------------------
    def _attn_vmem_bytes(t):
        return (hw_pad * t * (4 + 4 + 2)      # simT f32 + exp/where temp + p bf16
                + 2 * 2 * Ct * hw_pad * 2     # k, v blocks (double-buffered, bf16)
                + 2 * Cq * t * 4 + 2 * Co * t * 4
                + (2 << 20))

    if tq is not None and (tq % 128 != 0 or hw_pad % tq != 0):
        tq = None                              # invalid user tile -> auto-select
    if tq is None:
        tq = next((t for t in (1024, 512, 256, 128)
                   if hw_pad % t == 0 and _attn_vmem_bytes(t) <= budget), 128)

    attn_kernel = functools.partial(_attn_kernel, ct=Ct, cq=Cq, co=Co,
                                    hw=HW, hw_pad=hw_pad, exp_bf16=_exp_in_bf16())

    out = pl.pallas_call(
        attn_kernel,
        out_shape=jax.ShapeDtypeStruct((B, Co, hw_pad), jnp.float32),
        grid_spec=pltpu.PrefetchScalarGridSpec(
            num_scalar_prefetch=0,
            grid=(B, hw_pad // tq),
            in_specs=[
                pl.BlockSpec((1, Cq, tq), lambda b, j: (b, 0, j)),       # query tile
                pl.BlockSpec((1, Ct, hw_pad), lambda b, j: (b, 0, 0)),   # k, whole image
                pl.BlockSpec((1, Ct, hw_pad), lambda b, j: (b, 0, 0)),   # v, whole image
                pl.BlockSpec(w_q.shape, lambda b, j: (0, 0)),
                pl.BlockSpec(b_q.shape, lambda b, j: (0, 0)),
            ],
            out_specs=pl.BlockSpec((1, Co, tq), lambda b, j: (b, 0, j)),
        ),
        compiler_params=pltpu.CompilerParams(
            dimension_semantics=("parallel", "parallel"),
            vmem_limit_bytes=int(min(max(_attn_vmem_bytes(tq) + (8 << 20), 32 << 20),
                                     int(vmem_cap * 0.85))),
        ),
        cost_estimate=pl.CostEstimate(
            flops=int(2.0 * B * hw_pad * (Ct * Cq + Ct * Ct + Ct * Co)
                      + 4.0 * B * hw_pad * hw_pad * Ct),
            transcendentals=int(B * hw_pad * hw_pad),
            bytes_accessed=int(qf.size * 4 + 2 * B * Ct * hw_pad * 2 * 2
                               + B * Co * hw_pad * 4),
        ),
    )(qf, k_bf, v_bf, w_q, b_q)

    if hw_pad != HW:
        out = out[:, :, :HW]
    return out.reshape(B, Co, H, W)


# --------------------------- parameter construction ---------------------------

def make_params(key, key_in_channels, query_in_channels, transform_channels,
                out_channels, key_query_num_convs, value_out_num_convs):
    """Deterministically build fused (conv+BN) projection parameters."""
    def conv_bn(k, cin, cout):
        kw, kg, kb, km, kv = jax.random.split(k, 5)
        w = jax.random.normal(kw, (cout, cin), jnp.float32) * 0.2
        gamma = 1.0 + 0.1 * jax.random.normal(kg, (cout,), jnp.float32)
        beta = 0.1 * jax.random.normal(kb, (cout,), jnp.float32)
        mean = 0.1 * jax.random.normal(km, (cout,), jnp.float32)
        var = jnp.abs(jax.random.normal(kv, (cout,), jnp.float32)) + 0.5
        return _fuse_conv_bn(w, gamma, beta, mean, var)

    def project(k, cin, cout, num_convs):
        ks = jax.random.split(k, num_convs)
        layers = [conv_bn(ks[0], cin, cout)]
        for i in range(1, num_convs):
            layers.append(conv_bn(ks[i], cout, cout))
        return tuple(layers)

    kq, kk, kv_, ko = jax.random.split(key, 4)
    return {
        "query": project(kq, query_in_channels, transform_channels, key_query_num_convs),
        "key": project(kk, key_in_channels, transform_channels, key_query_num_convs),
        "value": project(kv_, key_in_channels, transform_channels, value_out_num_convs),
        "out": project(ko, transform_channels, out_channels, value_out_num_convs),
    }


# ------------------------------ pure-JAX reference ----------------------------

def _ref_forward(query_feats, key_feats, params, transform_channels):
    def proj(x, layers):                       # x: (B, Cin, HW), channel-major
        for w, b in layers:
            x = jnp.maximum(jnp.einsum("oc,bcn->bon", w, x) + b[None], 0.0)
        return x

    B, Cq, H, W = query_feats.shape
    Ck = key_feats.shape[1]
    HW = H * W
    qf = query_feats.reshape(B, Cq, HW)
    kf = key_feats.reshape(B, Ck, HW)
    q = proj(qf, params["query"])              # (B, Ct, HW)
    k = proj(kf, params["key"])
    v = proj(kf, params["value"])
    sim = jnp.einsum("bcq,bck->bqk", q, k) * (transform_channels ** -0.5)
    p = jax.nn.softmax(sim, axis=-1)
    ctx = jnp.einsum("bqk,bck->bcq", p, v)     # (B, Ct, HW)
    out = proj(ctx, params["out"])             # (B, Co, HW)
    Co = out.shape[1]
    return out.reshape(B, Co, H, W)


# ------------------------------------ main ------------------------------------

if __name__ == "__main__":
    key = jax.random.PRNGKey(0)
    k_params, k_q, k_k = jax.random.split(key, 3)

    # small, module-consistent shapes
    B, H, W = 2, 16, 16
    key_in_channels = 6
    query_in_channels = 4
    transform_channels = 8
    out_channels = 4
    key_query_num_convs = 2
    value_out_num_convs = 1

    params = make_params(k_params, key_in_channels, query_in_channels,
                         transform_channels, out_channels,
                         key_query_num_convs, value_out_num_convs)

    query_feats = jax.random.normal(k_q, (B, query_in_channels, H, W), jnp.float32)
    key_feats = jax.random.normal(k_k, (B, key_in_channels, H, W), jnp.float32)

    # tq=128 exercises the multi-tile path: grid = (B, HW // 128) = (2, 2)
    out = self_attention_block(query_feats, key_feats, params, transform_channels, tq=128)
    out = jax.block_until_ready(out)

    ref = jax.block_until_ready(
        _ref_forward(query_feats, key_feats, params, transform_channels))

    assert out.shape == (B, out_channels, H, W), out.shape
    assert bool(jnp.all(jnp.isfinite(out)))
    # bf16 MXU operands / bf16 exp (v6e+/v7x) / approx reciprocal vs pure-f32 reference
    assert jnp.allclose(out, ref, rtol=2e-2, atol=2e-2), float(jnp.max(jnp.abs(out - ref)))

    print("KERNEL_OK")
</pallas_src>

<mosaic_0001>
module attributes {stable_mosaic.version = 11 : i64} {
  func.func @_kv_project_kernel(%arg0: i32, %arg1: i32, %arg2: memref<1x6x256xf32, #tpu.memory_space<vmem>>, %arg3: memref<24x8xf32, #tpu.memory_space<vmem>>, %arg4: memref<24x1xf32, #tpu.memory_space<vmem>>, %arg5: memref<1x8x256xbf16, #tpu.memory_space<vmem>>, %arg6: memref<1x8x256xbf16, #tpu.memory_space<vmem>>) attributes {dimension_semantics = [#tpu.dimension_semantics<parallel>, #tpu.dimension_semantics<parallel>], iteration_bounds = array<i64: 2, 1>, scalar_prefetch = 0 : i64, scratch_operands = 0 : i64, tpu.core_type = #tpu.core_type<tc>, window_params = [{transform_indices = @transform_0, window_bounds = array<i64: 1, 6, 256>}, {pipeline_mode = #tpu.pipeline_mode<synchronous>, transform_indices = @transform_1, window_bounds = array<i64: 24, 8>}, {pipeline_mode = #tpu.pipeline_mode<synchronous>, transform_indices = @transform_2, window_bounds = array<i64: 24, 1>}, {transform_indices = @transform_3, window_bounds = array<i64: 1, 8, 256>}, {transform_indices = @transform_4, window_bounds = array<i64: 1, 8, 256>}]} {
    %c0 = arith.constant 0 : index
    %c0_0 = arith.constant 0 : index
    %c0_1 = arith.constant 0 : index
    %0 = vector.load %arg2[%c0, %c0_0, %c0_1] : memref<1x6x256xf32, #tpu.memory_space<vmem>>, vector<1x6x256xf32>
    %1 = vector.shape_cast %0 : vector<1x6x256xf32> to vector<6x256xf32>
    %c0_2 = arith.constant 0 : index
    %c0_3 = arith.constant 0 : index
    %2 = vector.load %arg3[%c0_2, %c0_3] : memref<24x8xf32, #tpu.memory_space<vmem>>, vector<24x8xf32>
    %c0_4 = arith.constant 0 : index
    %c0_5 = arith.constant 0 : index
    %3 = vector.load %arg4[%c0_4, %c0_5] : memref<24x1xf32, #tpu.memory_space<vmem>>, vector<24x1xf32>
    %4 = vector.extract_strided_slice %2 {offsets = [0, 0], sizes = [16, 6], strides = [1, 1]} : vector<24x8xf32> to vector<16x6xf32>
    %5 = vector.extract_strided_slice %3 {offsets = [0, 0], sizes = [16, 1], strides = [1, 1]} : vector<24x1xf32> to vector<16x1xf32>
    %6 = vector.extract_strided_slice %2 {offsets = [16, 0], sizes = [8, 8], strides = [1, 1]} : vector<24x8xf32> to vector<8x8xf32>
    %7 = vector.extract_strided_slice %3 {offsets = [16, 0], sizes = [8, 1], strides = [1, 1]} : vector<24x1xf32> to vector<8x1xf32>
    %cst = arith.constant dense<0.000000e+00> : vector<16x256xf32>
    %8 = tpu.matmul %4, %1, %cst {dimension_numbers = #tpu.dot_dimension_numbers<[1], [0], [0], [1], [0, 0, 1, 1], [], []>} : vector<16x6xf32>, vector<6x256xf32>, vector<16x256xf32> -> vector<16x256xf32>
    %9 = vector.broadcast %5 : vector<16x1xf32> to vector<16x256xf32>
    %10 = arith.addf %8, %9 : vector<16x256xf32>
    %cst_6 = arith.constant 0.000000e+00 : f32
    %11 = vector.broadcast %cst_6 : f32 to vector<16x256xf32>
    %12 = arith.maximumf %10, %11 : vector<16x256xf32>
    %13 = vector.extract_strided_slice %12 {offsets = [0, 0], sizes = [8, 256], strides = [1, 1]} : vector<16x256xf32> to vector<8x256xf32>
    %cst_7 = arith.constant dense<0.000000e+00> : vector<8x256xf32>
    %14 = tpu.matmul %6, %13, %cst_7 {dimension_numbers = #tpu.dot_dimension_numbers<[1], [0], [0], [1], [0, 0, 1, 1], [], []>} : vector<8x8xf32>, vector<8x256xf32>, vector<8x256xf32> -> vector<8x256xf32>
    %15 = vector.broadcast %7 : vector<8x1xf32> to vector<8x256xf32>
    %16 = arith.addf %14, %15 : vector<8x256xf32>
    %cst_8 = arith.constant 0.000000e+00 : f32
    %17 = vector.broadcast %cst_8 : f32 to vector<8x256xf32>
    %18 = arith.maximumf %16, %17 : vector<8x256xf32>
    %19 = arith.truncf %18 : vector<8x256xf32> to vector<8x256xbf16>
    %c0_9 = arith.constant 0 : index
    %c0_10 = arith.constant 0 : index
    %c0_11 = arith.constant 0 : index
    %20 = vector.load %arg5[%c0_9, %c0_10, %c0_11] : memref<1x8x256xbf16, #tpu.memory_space<vmem>>, vector<1x8x256xbf16>
    %21 = vector.shape_cast %20 : vector<1x8x256xbf16> to vector<8x256xbf16>
    %22 = vector.shape_cast %19 : vector<8x256xbf16> to vector<1x8x256xbf16>
    tpu.vector_store %arg5[%c0_9, %c0_10, %c0_11], %22 {strides = array<i32>} : memref<1x8x256xbf16, #tpu.memory_space<vmem>>, vector<1x8x256xbf16>,
    %23 = vector.extract_strided_slice %12 {offsets = [8, 0], sizes = [8, 256], strides = [1, 1]} : vector<16x256xf32> to vector<8x256xf32>
    %24 = arith.truncf %23 : vector<8x256xf32> to vector<8x256xbf16>
    %c0_12 = arith.constant 0 : index
    %c0_13 = arith.constant 0 : index
    %c0_14 = arith.constant 0 : index
    %25 = vector.load %arg6[%c0_12, %c0_13, %c0_14] : memref<1x8x256xbf16, #tpu.memory_space<vmem>>, vector<1x8x256xbf16>
    %26 = vector.shape_cast %25 : vector<1x8x256xbf16> to vector<8x256xbf16>
    %27 = vector.shape_cast %24 : vector<8x256xbf16> to vector<1x8x256xbf16>
    tpu.vector_store %arg6[%c0_12, %c0_13, %c0_14], %27 {strides = array<i32>} : memref<1x8x256xbf16, #tpu.memory_space<vmem>>, vector<1x8x256xbf16>,
    return
  }
  func.func @transform_0(%arg0: i32, %arg1: i32) -> (i32, i32, i32) {
    %c0_i32 = arith.constant 0 : i32
    %c0_i32_0 = arith.constant 0 : i32
    return %arg0, %c0_i32, %arg1 : i32, i32, i32
  }
  func.func @transform_1(%arg0: i32, %arg1: i32) -> (i32, i32) {
    %c0_i32 = arith.constant 0 : i32
    %c0_i32_0 = arith.constant 0 : i32
    %c0_i32_1 = arith.constant 0 : i32
    return %c0_i32, %c0_i32_0 : i32, i32
  }
  func.func @transform_2(%arg0: i32, %arg1: i32) -> (i32, i32) {
    %c0_i32 = arith.constant 0 : i32
    %c0_i32_0 = arith.constant 0 : i32
    %c0_i32_1 = arith.constant 0 : i32
    return %c0_i32, %c0_i32_0 : i32, i32
  }
  func.func @transform_3(%arg0: i32, %arg1: i32) -> (i32, i32, i32) {
    %c0_i32 = arith.constant 0 : i32
    %c0_i32_0 = arith.constant 0 : i32
    return %arg0, %c0_i32, %arg1 : i32, i32, i32
  }
  func.func @transform_4(%arg0: i32, %arg1: i32) -> (i32, i32, i32) {
    %c0_i32 = arith.constant 0 : i32
    %c0_i32_0 = arith.constant 0 : i32
    return %arg0, %c0_i32, %arg1 : i32, i32, i32
  }
}

</mosaic_0001>

<bundles_post_ra>
// kernel: tpu_custom_call.1
= control target key start
LH: loop header
LB: loop body
LE: loop exit
PB: predicated region body
PF: predicated region fallthrough
CT: control target
= control target key end

     0   :  { %10 = vsyncpa [#allocation3], 0  ;;  %s978_s0 = inlined_call_operand.vmem [shape: f32[2,6,256], index: 0, kind: input, shape index: {}]   ;;  %s979_s1 = inlined_call_operand.vmem [shape: f32[24,8], index: 1, kind: input, shape index: {}]   ;;  %s980_s2 = inlined_call_operand.vmem [shape: f32[24,1], index: 2, kind: input, shape index: {}]   ;;  %s981_s3 = inlined_call_operand.hbm [shape: bf16[2,8,256], index: 3, kind: output, shape index: {0}]   ;;  %s982_s4 = inlined_call_operand.hbm [shape: bf16[2,8,256], index: 4, kind: output, shape index: {1}]  }
   0x1   :  { %12 = vsyncpa [#allocation3 + $0x1], 0 }
   0x2   :  { %13 = vsyncpa [#allocation5], 0 }
   0x3   :  { %15 = vsyncpa [#allocation5 + $0x1], 0  ;;  %s833_s15 = smov 0   ;;  %s835_s16 = smov 0  }
   0x4   :  { %s837_s17 = smov 0   ;;  %s839_s18 = smov 0  }
   0x5   :  { %s841_s19 = smov 0   ;;  %s843_s20 = smov 0  }
   0x6 LB: > { %s603_s21 = sadd.s32 4294967295, %s802_s20   ;;  %s604_s22 = sadd.s32 4294967294, %s802_s20   ;;  %s802_s20 = sphi %s843_s20, %s21_s20   ;;  %s798_s19 = sphi %s841_s19, %s989_s19   ;;  %s794_s18 = sphi %s839_s18, %s988_s18   ;;  %s790_s17 = sphi %s837_s17, %s987_s17   ;;  %s786_s16 = sphi %s835_s16, %s986_s16   ;;  %s782_s15 = sphi %s833_s15, %s985_s15  }
   0x7   : > { %s33_s23 = sadd.s32 1, %s798_s19  ;;  %s112_s24 = sadd.s32 1, %s790_s17 }
   0x8   : > { %p35_p0 = scmp.ge.s32.totalorder %s33_s23, 2  ;;  %p122_p1 = scmp.ne.s32.totalorder %s790_s17, %s786_s16 }
   0x9   : > { %p123_p2 = scmp.eq.s32.totalorder %s603_s21, 1  ;;  %p128_p3 = scmp.ne.s32.totalorder %s786_s16, %s782_s15 }
   0xa   : > { %s991_s23 = smov (%p35_p0, %s33_s23), 0  ;;  %p129_p5 = scmp.eq.s32.totalorder %s604_s22, 1 }
   0xb   : > { %p873_p4 = por %p123_p2, %p122_p1  ;;  %s107_s26 = ssub.s32 %s798_s19, %s991_s23 }
   0xc   : > { %p607_p6 = scmp.ge.s32.totalorder %s802_s20, 1  ;;  %p110_p7 = scmp.eq.s32.totalorder %s107_s26, 0 }
   0xd   : > { %p880_p8 = por %p129_p5, %p128_p3  ;;  %p194_p9 = scmp.lt.s32.totalorder %s802_s20, 3 }
   0xe   : > { %s886_s28 = scalar_select %p110_p7, %s790_s17, %s112_s24  }
   0xf   : > { %p195_p10 = pnand %p607_p6, %p194_p9 }
  0x10   : > { %p230_p11 = scmp.lt.s32.totalorder (!%p195_p10), %s794_s18, 1  ;;  %s909_s26 = sand.u32 (!%p195_p10), 1, %s786_s16  }
  0x11   : > { %198 = sbr.rel (%p195_p10) target bundleno = 444 (0x1bc), region = 32  ;;  %s630_s7 = sshll.u32 (!%p195_p10), %s794_s18, 7 }
  0x12   : > { %s490_s10 = scalar_lea.hbm (!%p195_p10), %s982_s4, %s630_s7  ;;  %s460_s12 = scalar_lea.sflag (!%p195_p10), [#allocation5], %s909_s26 }
  0x13   : > { %s806_s14 = smov (!%p195_p10), [#allocation4]  }
  0x14   : > { %s700_s21 = sshll.u32 (!%p195_p10), %s806_s14, 4  ;;  %s701_s21 = int_to_ptr.vmem [resolvable:$false] %s700_s21 }
  0x15   : > { %s702_s22 = scalar_lea.vmem (!%p195_p10), %s701_s21, 256 }
  0x16   : > { %v804_v0 = vmov 0.0   ;;  %v246_v1 = vld [vmem:[%s980_s2] sm:$0xff]  ;;  %s231_s5 = scalar_select %p230_p11, %s794_s18, 1  ;;  %v805_v2 = vmov 0   ;;  %vm266_vm0 = vcmask 1045504   ;;  %v247_v3 = vld [vmem:[%s980_s2 + $0x8] sm:$0xff] }
  0x17   : > { %337 = vmatprep.mubr.f32.mxu0 %v804_v0  ;;  %427 = vmatprep.mubr.f32.mxu1 %v804_v0  ;;  %v243_v6 = vld [vmem:[%s979_s1] sm:$0xff]  ;;  %vm259_vm1 = vcmask 48128   ;;  %v244_v7 = vld [vmem:[%s979_s1 + $0x8] sm:$0xff]  ;;  %v248_v8 = vld [vmem:[%s980_s2 + $0x10] sm:$0xff]  ;;  %vm359_vm2 = vcmask 64512  }
  0x18   : > { %694 = vset.pattern.permute.xlu0 %v805_v2  ;;  %695 = vset.pattern.permute.xlu1 %v805_v2  ;;  %s627_s6 = sshll.u32 %s231_s5, 4  ;;  %v245_v20 = vld [vmem:[%s979_s1 + $0x10] sm:$0xff]  ;;  %s608_s5 = sshll.u32 %s909_s26, 3 }
  0x19   : > { %251 = vperm.xlu0 %694, %v246_v1   ;;  %s237_s11 = scalar_lea.vmem %s978_s0, %s627_s6  ;;  %356 = vperm.xlu1 %695, %v248_v8   ;;  %s228_s6 = scalar_lea.vmem [#allocation4], %s608_s5 }
  0x1a   : > { %v242_v4 = vld [vmem:[%s237_s11 + $0x8] sm:$0x3f]  ;;  %v241_v5 = vld [vmem:[%s237_s11] sm:$0x3f]  ;;  %s492_s11 = sshll.u32 %s228_s6, 4  ;;  %s493_s11 = int_to_ptr.vmem [resolvable:$true] %s492_s11 }
  0x1b   : > { %612 = vmatprep.subr.msk.mxu0 %vm266_vm0, %v242_v4  ;;  %s696_s13 = scalar_lea.vmem %s493_s11, 128  ;;  %p703_p1 = scmp.lt.s32.totalorder %s493_s11, %s701_s21 }
  0x1c   : > { %613 = vmatpush1.msk.msra.mxu0 %vm266_vm0, %v241_v5  ;;  %p697_p12 = scmp.ne.s32.totalorder %s493_s11, %s696_s13  ;;  %p704_p2 = scmp.lt.s32.totalorder %s702_s22, %s696_s13 }
  0x1d   : > { %256 = vperm.xlu0 %694, %v247_v3   ;;  %614 = vmatmul.mubr.msk.f32.vlgmr.msra.gmra.mxu0 %vm259_vm1, %v243_v6 }
  0x1e   : > { %343 = vmatprep.mubr.f32.mxu0 %v804_v0  ;;  %p698_p13 = pnand %p697_p12, %p873_p4  ;;  %p705_p3 = por %p704_p2, %p703_p1 }
  0x20   : > { %p699_p0 = pneg %p698_p13 }
  0x21   : > { %615 = vmatmul.mubr.msk.f32.gmra.mxu0 %vm259_vm1, %v244_v7 }
  0x22   : > { %p706_p5 = pnand %p705_p3, %p699_p0 }
  0x94   : > { %v252_v9 = vpop.permute.xlu0 %251 }
  0x98   : > { %v257_v14 = vpop.permute.xlu0 %256 }
  0xdd   : > { %v339_v10 = vpop.f32.mrf.mxu0 }
  0xde   : > { %v340_v11 = vadd.f32 %v339_v10, %v252_v9 }
  0xdf   : > { %v341_v12 = vpop.f32.mrf.mxu0 }
  0xe0   : > { %v342_v13 = vadd.f32 %v341_v12, %v252_v9  ;;  %v350_v18 = vmax.f32 %v340_v11, 0.0 }
  0xe1   : > { %v345_v15 = vpop.f32.mrf.mxu0 }
  0xe2   : > { %v346_v16 = vadd.f32 %v345_v15, %v257_v14  ;;  %v351_v17 = vmax.f32 %v342_v13, 0.0 }
  0xe3   : > { %v347_v19 = vpop.f32.mrf.mxu0 }
  0xe4   : > { %v348_v21 = vadd.f32 %v347_v19, %v257_v14  ;;  %393 = vmatprep.subr.mxu1 %v351_v17  ;;  %v352_v22 = vmax.f32 %v346_v16, 0.0 }
  0xe5   : > { %394 = vmatpush1.msra.mxu1 %v350_v18 }
  0xe6   : > { %v353_v23 = vmax.f32 %v348_v21, 0.0  ;;  %616 = vmatmul.mubr.msk.f32.vlgmr.msra.gmra.mxu1 %vm359_vm2, %v245_v20 }
  0xe8   : > { %v629_v24 = vpack.c.bf16 %v353_v23, %v352_v22 }
  0xea   : > { %453 = vst [vmem:[%s228_s6] sm:$0xff] %v629_v24 }
  0xeb   : > { %709 = shalt.err (!%p706_p5)
}
  0xec   : > { %s710_s24 = scalar_lea.hbm %s490_s10, 128  ;;  %s714_s6 = scalar_lea.hbm %s982_s4, 256 }
  0xed   : > { %p711_p6 = scmp.ne.s32.totalorder %s490_s10, %s710_s24  ;;  %p715_p10 = scmp.lt.s32.totalorder %s490_s10, %s982_s4 }
  0xee   : > { %p716_p11 = scmp.lt.s32.totalorder %s714_s6, %s710_s24 }
  0xef   : > { %p712_p7 = pnand %p711_p6, %p873_p4 }
  0xf0   : > { %p717_p12 = por %p716_p11, %p715_p10 }
  0xf1   : > { %p713_p9 = pneg %p712_p7 }
  0xf3   : > { %p718_p13 = pnand %p717_p12, %p713_p9 }
  0xf5   : > { %721 = shalt.err (!%p718_p13)
}
  0xf6   : > { %633 = dma.vmem_to_hbm [thread:$0]  (%p873_p4), %s493_s11, 128, %s490_s10, %s460_s12   ;;  %v357_v25 = vpop.permute.xlu1 %356 }
  0xf7   : > { %s221_s13 = scalar_lea.vmem [#allocation2], %s608_s5  ;;  %s474_s24 = scalar_lea.hbm %s981_s3, %s630_s7 }
  0xf8   : > { %s476_s14 = sshll.u32 %s221_s13, 4  ;;  %s455_s10 = scalar_lea.sflag [#allocation3], %s909_s26  ;;  %s477_s14 = int_to_ptr.vmem [resolvable:$true] %s476_s14 }
  0xf9   : > { %s722_s11 = scalar_lea.vmem %s477_s14, 128  ;;  %s807_s12 = smov [#allocation2]  }
  0xfa   : > { %p723_p0 = scmp.ne.s32.totalorder %s477_s14, %s722_s11  ;;  %s726_s29 = sshll.u32 %s807_s12, 4  ;;  %s727_s29 = int_to_ptr.vmem [resolvable:$false] %s726_s29 }
  0xfb   : > { %s728_s5 = scalar_lea.vmem %s727_s29, 256  ;;  %p729_p3 = scmp.lt.s32.totalorder %s477_s14, %s727_s29 }
  0xfc   : > { %p724_p1 = pnand %p723_p0, %p873_p4  ;;  %p730_p5 = scmp.lt.s32.totalorder %s728_s5, %s722_s11 }
  0xfe   : > { %p725_p2 = pneg %p724_p1  ;;  %p731_p6 = por %p730_p5, %p729_p3 }
 0x100   : > { %p732_p7 = pnand %p731_p6, %p725_p2 }
 0x1a6   : > { %v429_v26 = vpop.f32.mrf.mxu1 }
 0x1a7   : > { %v430_v27 = vadd.f32 %v429_v26, %v357_v25 }
 0x1a8   : > { %v431_v28 = vpop.f32.mrf.mxu1 }
 0x1a9   : > { %v432_v29 = vadd.f32 %v431_v28, %v357_v25  ;;  %v434_v30 = vmax.f32 %v430_v27, 0.0 }
 0x1ab   : > { %v435_v31 = vmax.f32 %v432_v29, 0.0 }
 0x1ad   : > { %v628_v32 = vpack.c.bf16 %v435_v31, %v434_v30 }
 0x1af   : > { %444 = vst [vmem:[%s221_s13] sm:$0xff] %v628_v32 }
 0x1b0   : > { %735 = shalt.err (!%p732_p7)
}
 0x1b1   : > { %s736_s18 = scalar_lea.hbm %s474_s24, 128  ;;  %s740_s30 = scalar_lea.hbm %s981_s3, 256 }
 0x1b2   : > { %p737_p9 = scmp.ne.s32.totalorder %s474_s24, %s736_s18  ;;  %p741_p12 = scmp.lt.s32.totalorder %s474_s24, %s981_s3 }
 0x1b3   : > { %p742_p13 = scmp.lt.s32.totalorder %s740_s30, %s736_s18 }
 0x1b4   : > { %p738_p10 = pnand %p737_p9, %p873_p4 }
 0x1b5   : > { %p743_p0 = por %p742_p13, %p741_p12 }
 0x1b6   : > { %p739_p11 = pneg %p738_p10 }
 0x1b8   : > { %p744_p1 = pnand %p743_p0, %p739_p11 }
 0x1ba   : > { %747 = shalt.err (!%p744_p1)
}
 0x1bb   : > { %632 = dma.vmem_to_hbm [thread:$0]  (%p873_p4), %s477_s14, 128, %s474_s24, %s455_s10  }
 0x1bc PF: > { %p643_p2 = scmp.ge.s32.totalorder %s802_s20, 2  ;;  %s504_s9 = sand.u32 1, %s782_s15  }
 0x1bd   : > { %s505_s13 = scalar_lea.sflag [#allocation3], %s504_s9 }
 0x1be   : > { %p637_p3 = pnand %p643_p2, %p880_p8 }
 0x1c0   : > { %p638_p5 = pneg %p637_p3 }
 0x1c2   : > { %773 = dma.done.wait (%p638_p5), %s505_s13, 128  }
 0x1c3   : > { %775 = vsyncadd (%p638_p5), %s505_s13, 4294967168  ;;  %s514_s21 = scalar_lea.sflag [#allocation5], %s504_s9 }
 0x1c4   : > { %777 = dma.done.wait (%p638_p5), %s514_s21, 128  }
 0x1c5   : > { %779 = vsyncadd (%p638_p5), %s514_s21, 4294967168  ;;  %s21_s20 = sadd.s32 1, %s802_s20   ;;  %s985_s15 = smov %s786_s16 }
 0x1c6   : > { %p18_p6 = scmp.ge.s32.totalorder %s21_s20, 4   ;;  %s986_s16 = smov %s790_s17 }
 0x1c7   : > { %s987_s17 = smov %s886_s28  ;;  %s988_s18 = smov %s798_s19 }
 0x1c8   : > { %s989_s19 = smov %s991_s23  ;;  %20 = sbr.rel (!%p18_p6) target bundleno = 6 (0x6), region = 84 }
 0x1cd   :  { %519 = vsyncpa [#allocation3], 1 }
 0x1ce   :  { %521 = vsyncpa [#allocation3 + $0x1], 1 }
 0x1cf   :  { %522 = vsyncpa [#allocation5], 1 }
 0x1d0   :  { %524 = vsyncpa [#allocation5 + $0x1], 1 }

</bundles_post_ra>
